<compile_context>
chip_gen: v7x
topology: tpu7x:2x2x1
jax: 0.10.0
libtpu: 0.0.40
codegen_flags: <defaults>
</compile_context>

<pallas_src>
import functools
import math

import jax
import jax.numpy as jnp
from jax import lax
from jax.experimental import pallas as pl
from jax.experimental.pallas import tpu as pltpu


_INV_SQRT2 = 1.0 / math.sqrt(2.0)


def _gelu_exact(x):
    # nn.GELU() default: 0.5 * x * (1 + erf(x / sqrt(2))). Computed in f32
    # (safe on v5e, which has no bf16 VPU).
    return 0.5 * x * (1.0 + lax.erf(x * _INV_SQRT2))


def _round_up(v, m):
    return ((v + m - 1) // m) * m


def _sublane_min(dtype):
    # Packed sublane count per dtype: f32 -> 8, bf16 -> 16, int8/fp8 -> 32.
    return {4: 8, 2: 16, 1: 32}.get(jnp.dtype(dtype).itemsize, 8)


def _vmem_capacity_bytes():
    try:
        return int(pltpu.get_tpu_info().vmem_capacity_bytes)
    except Exception:
        return 128 * 2**20  # v5e/v6e physical VMEM; v7x is caught by the query


def _default_tile_m():
    try:
        kind = jax.devices()[0].device_kind.lower()
    except Exception:
        return 256
    # v5e-class chips have a 4x128^2 MXU -> 128-row tiles already fill it;
    # v6e / v7x have 2x256^2 MXUs -> 256-row tiles.
    if ("v5 lite" in kind or "v5e" in kind or "v5lite" in kind
            or "v4" in kind or "v3" in kind or "v2" in kind):
        return 128
    return 256


def _single_buffer_spec(shape, index_map):
    """BlockSpec for grid-invariant blocks: 1 buffer instead of 2 (VMEM saver)."""
    try:
        return pl.BlockSpec(shape, index_map, pipeline_mode=pl.Buffered(1))
    except (TypeError, AttributeError):
        return pl.BlockSpec(shape, index_map)  # older JAX: default buffering


# ----------------------------------------------------------------------------
# Kernels
# ----------------------------------------------------------------------------

def _mlp_kernel_whole(x_ref, w1_ref, b1_ref, w2_ref, b2_ref, o_ref):
    """Whole hidden dim resident: no accumulator scratch, fused epilogue."""
    h = jnp.dot(x_ref[...], w1_ref[...], preferred_element_type=jnp.float32)
    h = _gelu_exact(h + b1_ref[...].astype(jnp.float32))
    # dropout(p=0.0) == identity (elided)
    y = jnp.dot(h.astype(w2_ref.dtype), w2_ref[...],
                preferred_element_type=jnp.float32)
    o_ref[...] = (y + b2_ref[...].astype(jnp.float32)).astype(o_ref.dtype)


def _mlp_kernel_chunked_f32out(x_ref, w1_ref, b1_ref, w2_ref, b2_ref, o_ref):
    """H chunked, f32 output: the resident output block IS the accumulator."""
    k = pl.program_id(1)

    @pl.when(k == 0)
    def _():
        o_ref[...] = jnp.zeros_like(o_ref)

    h = jnp.dot(x_ref[...], w1_ref[...], preferred_element_type=jnp.float32)
    h = _gelu_exact(h + b1_ref[...].astype(jnp.float32))
    o_ref[...] += jnp.dot(h.astype(w2_ref.dtype), w2_ref[...],
                          preferred_element_type=jnp.float32)

    @pl.when(k == pl.num_programs(1) - 1)
    def _():
        o_ref[...] += b2_ref[...].astype(jnp.float32)


def _mlp_kernel_chunked_acc(x_ref, w1_ref, b1_ref, w2_ref, b2_ref, o_ref,
                            acc_ref):
    """H chunked, low-precision output: f32 VMEM accumulator, fused downcast."""
    k = pl.program_id(1)

    @pl.when(k == 0)
    def _():
        acc_ref[...] = jnp.zeros_like(acc_ref)

    h = jnp.dot(x_ref[...], w1_ref[...], preferred_element_type=jnp.float32)
    h = _gelu_exact(h + b1_ref[...].astype(jnp.float32))
    acc_ref[...] += jnp.dot(h.astype(w2_ref.dtype), w2_ref[...],
                            preferred_element_type=jnp.float32)

    @pl.when(k == pl.num_programs(1) - 1)
    def _():
        o_ref[...] = (acc_ref[...]
                      + b2_ref[...].astype(jnp.float32)).astype(o_ref.dtype)


# ----------------------------------------------------------------------------
# Wrapper
# ----------------------------------------------------------------------------

def _vmem_estimate(tile_m, c_in, c_out, block_h, n_h, x_item, w_item, b_item,
                   out_item, needs_acc):
    w_bufs = 1 if n_h == 1 else 2
    return (2 * tile_m * c_in * x_item                               # x tiles
            + 2 * tile_m * c_out * out_item                          # out tiles
            + w_bufs * (c_in * block_h + block_h * c_out) * w_item   # weights
            + (w_bufs * block_h + c_out) * b_item                    # biases
            + (tile_m * c_out * 4 if needs_acc else 0)               # accumulator
            + tile_m * block_h * 4)                                  # f32 hidden act


@functools.partial(jax.jit, static_argnames=("tile_m", "block_h"))
def mlp_forward(x, w1, b1, w2, b2, *, tile_m=None, block_h=None):
    """x: (B, N, C_in); weights pre-transposed: w1 (C_in, H), w2 (H, C_out).

    tile_m : token-row tile; None -> per-chip default (256 on v6e/v7x, 128 v5e).
    block_h: hidden-dim chunk; None -> whole H if it fits the per-chip VMEM
             budget, else the largest 128-multiple divisor of H that fits.
    """
    B, N, C_in = x.shape
    H = w1.shape[1]
    C_out = w2.shape[1]
    M = B * N

    out_dtype = x.dtype
    x_item = jnp.dtype(x.dtype).itemsize
    w_item = jnp.dtype(w1.dtype).itemsize
    b_item = jnp.dtype(b1.dtype).itemsize
    out_item = jnp.dtype(out_dtype).itemsize

    sub_min = _sublane_min(x.dtype)
    if tile_m is None:
        tile_m = _default_tile_m()
    tile_m = _round_up(max(sub_min, min(tile_m, _round_up(M, sub_min))), sub_min)

    # Per-chip VMEM budget (leave headroom for compiler-internal scratch).
    vmem_cap = _vmem_capacity_bytes()
    budget = int(vmem_cap * 0.75)        # ~48 MiB on v7x, ~96 MiB on v5e/v6e

    def _fits(bh, n_h, needs_acc):
        return _vmem_estimate(tile_m, C_in, C_out, bh, n_h, x_item, w_item,
                              b_item, out_item, needs_acc) <= budget

    # ---- hidden-dim chunking: prefer whole-H residency whenever it fits ----
    if block_h is None:
        if H % 128 != 0 or _fits(H, 1, False):
            block_h = H
        else:
            cands = [d for d in range(128, H, 128) if H % d == 0]
            block_h = H
            for d in sorted(cands, reverse=True):
                if _fits(d, H // d, out_dtype != jnp.float32):
                    block_h = d
                    break
            else:
                if cands:
                    block_h = min(cands)
    else:
        block_h = min(block_h, H)
        assert H % block_h == 0, "hidden_features must be divisible by block_h"
        if block_h != H:
            assert block_h % 128 == 0, "block_h must be a multiple of 128 lanes"

    n_h = H // block_h
    whole_h = (n_h == 1)

    # Whole-H path: give grid axis 0 at least two row tiles so both TensorCores
    # of a dual-TC chip (v7x) get work under dimension_semantics=("parallel",).
    # (Skipped when chunked: more row tiles would re-stream the weight chunks.)
    if whole_h and M > sub_min and _round_up(M, tile_m) // tile_m < 2:
        half = _round_up((M + 1) // 2, sub_min)
        tile_m = max(sub_min, min(tile_m, half))

    M_pad = _round_up(M, tile_m)
    grid_i = M_pad // tile_m

    x2d = x.reshape(M, C_in)
    if M_pad != M:
        x2d = jnp.pad(x2d, ((0, M_pad - M), (0, 0)))
    b1_2d = b1.reshape(1, H)
    b2_2d = b2.reshape(1, C_out)

    needs_acc = (not whole_h) and (out_dtype != jnp.float32)
    vmem_est = _vmem_estimate(tile_m, C_in, C_out, block_h, n_h, x_item,
                              w_item, b_item, out_item, needs_acc)
    vmem_limit = int(min(budget, max(32 * 2**20, int(vmem_est * 1.25))))

    # Honest cost estimate: weight chunks are re-streamed once per row tile
    # when H is chunked; erf is a VALU polynomial, not an EUP transcendental.
    weight_bytes = (C_in * H + H * C_out) * w_item * (1 if whole_h else grid_i)
    cost = pl.CostEstimate(
        flops=int(2 * M_pad * H * (C_in + C_out) + 8 * M_pad * H),
        transcendentals=0,
        bytes_accessed=int(M_pad * C_in * x_item + weight_bytes
                           + (H + C_out) * b_item + M_pad * C_out * out_item),
    )

    if whole_h:
        grid = (grid_i,)
        in_specs = [
            pl.BlockSpec((tile_m, C_in), lambda i: (i, 0)),          # x tile
            _single_buffer_spec((C_in, H), lambda i: (0, 0)),        # w1
            _single_buffer_spec((1, H), lambda i: (0, 0)),           # b1
            _single_buffer_spec((H, C_out), lambda i: (0, 0)),       # w2
            _single_buffer_spec((1, C_out), lambda i: (0, 0)),       # b2
        ]
        out_spec = pl.BlockSpec((tile_m, C_out), lambda i: (i, 0))
        kernel = _mlp_kernel_whole
        scratch = []
        dims = ("parallel",)
    else:
        grid = (grid_i, n_h)
        in_specs = [
            pl.BlockSpec((tile_m, C_in), lambda i, k: (i, 0)),       # x tile
            pl.BlockSpec((C_in, block_h), lambda i, k: (0, k)),      # w1 chunk
            pl.BlockSpec((1, block_h), lambda i, k: (0, k)),         # b1 chunk
            pl.BlockSpec((block_h, C_out), lambda i, k: (k, 0)),     # w2 chunk
            _single_buffer_spec((1, C_out), lambda i, k: (0, 0)),    # b2
        ]
        out_spec = pl.BlockSpec((tile_m, C_out), lambda i, k: (i, 0))
        dims = ("parallel", "arbitrary")
        if out_dtype == jnp.float32:
            kernel = _mlp_kernel_chunked_f32out   # o_ref doubles as accumulator
            scratch = []
        else:
            kernel = _mlp_kernel_chunked_acc
            scratch = [pltpu.VMEM((tile_m, C_out), jnp.float32)]

    out2d = pl.pallas_call(
        kernel,
        out_shape=jax.ShapeDtypeStruct((M_pad, C_out), out_dtype),
        grid_spec=pltpu.PrefetchScalarGridSpec(
            num_scalar_prefetch=0,
            grid=grid,
            in_specs=in_specs,
            out_specs=out_spec,
            scratch_shapes=scratch,
        ),
        compiler_params=pltpu.CompilerParams(
            dimension_semantics=dims,
            vmem_limit_bytes=vmem_limit,
        ),
        cost_estimate=cost,
    )(x2d, w1, b1_2d, w2, b2_2d)

    if M_pad != M:
        out2d = out2d[:M]
    return out2d.reshape(B, N, C_out)


# ----------------------------------------------------------------------------
# Params / reference / demo
# ----------------------------------------------------------------------------

def init_mlp_params(key, in_features, hidden_features, out_features,
                    dtype=jnp.float32):
    """nn.Linear-style init (uniform +/- 1/sqrt(fan_in)); weights pre-transposed
    to (in, out) so the kernel computes x @ W."""
    k1, k2, k3, k4 = jax.random.split(key, 4)
    lim1 = 1.0 / math.sqrt(in_features)
    lim2 = 1.0 / math.sqrt(hidden_features)
    w1 = jax.random.uniform(k1, (in_features, hidden_features),
                            minval=-lim1, maxval=lim1, dtype=dtype)
    b1 = jax.random.uniform(k2, (hidden_features,),
                            minval=-lim1, maxval=lim1, dtype=dtype)
    w2 = jax.random.uniform(k3, (hidden_features, out_features),
                            minval=-lim2, maxval=lim2, dtype=dtype)
    b2 = jax.random.uniform(k4, (out_features,),
                            minval=-lim2, maxval=lim2, dtype=dtype)
    return w1, b1, w2, b2


def _reference(x, w1, b1, w2, b2):
    xf = x.astype(jnp.float32).reshape(-1, x.shape[-1])
    h = xf @ w1.astype(jnp.float32) + b1.astype(jnp.float32)
    h = 0.5 * h * (1.0 + lax.erf(h * _INV_SQRT2))
    y = h @ w2.astype(jnp.float32) + b2.astype(jnp.float32)
    return y.reshape(x.shape[0], x.shape[1], -1)


if __name__ == "__main__":
    # Small, lane-aligned ViT-ish shapes: batch=2, tokens=64, C=128, hidden=256.
    B, N, C_IN, HID, C_OUT = 2, 64, 128, 256, 128

    key = jax.random.PRNGKey(0)
    kx, kp = jax.random.split(key)
    x = jax.random.normal(kx, (B, N, C_IN), dtype=jnp.float32)
    w1, b1, w2, b2 = init_mlp_params(kp, C_IN, HID, C_OUT, dtype=jnp.float32)

    # bf16 operand copies: the fast MXU path on v6e/v7x (f32 accumulation).
    xb = x.astype(jnp.bfloat16)
    w1b, b1b, w2b, b2b = (a.astype(jnp.bfloat16) for a in (w1, b1, w2, b2))

    # 1) bf16, whole-H resident: single-buffered weights, no accumulator scratch.
    out1 = jax.block_until_ready(mlp_forward(xb, w1b, b1b, w2b, b2b))
    ref1 = _reference(xb, w1b, b1b, w2b, b2b)
    assert out1.shape == (B, N, C_OUT)
    err1 = float(jnp.max(jnp.abs(out1.astype(jnp.float32) - ref1)))
    assert jnp.allclose(out1.astype(jnp.float32), ref1, atol=3e-2, rtol=3e-2), err1

    # 2) f32, ragged token count, hidden-chunked: accumulate into resident o_ref.
    x2 = x[:, :10]
    out2 = jax.block_until_ready(
        mlp_forward(x2, w1, b1, w2, b2, tile_m=64, block_h=128))
    ref2 = _reference(x2, w1, b1, w2, b2)
    assert out2.shape == (B, 10, C_OUT)
    err2 = float(jnp.max(jnp.abs(out2 - ref2)))
    assert jnp.allclose(out2, ref2, atol=2e-2, rtol=2e-2), err2

    # 3) bf16, hidden-chunked: f32 VMEM accumulator + fused downcast epilogue.
    out3 = jax.block_until_ready(mlp_forward(xb, w1b, b1b, w2b, b2b, block_h=128))
    err3 = float(jnp.max(jnp.abs(out3.astype(jnp.float32) - ref1)))
    assert jnp.allclose(out3.astype(jnp.float32), ref1, atol=3e-2, rtol=3e-2), err3

    print("KERNEL_OK")
</pallas_src>

<mosaic_0001>
module attributes {stable_mosaic.version = 11 : i64} {
  func.func @_mlp_kernel_whole(%arg0: i32, %arg1: memref<64x128xbf16, #tpu.memory_space<vmem>>, %arg2: memref<128x256xbf16, #tpu.memory_space<vmem>>, %arg3: memref<1x256xbf16, #tpu.memory_space<vmem>>, %arg4: memref<256x128xbf16, #tpu.memory_space<vmem>>, %arg5: memref<1x128xbf16, #tpu.memory_space<vmem>>, %arg6: memref<64x128xbf16, #tpu.memory_space<vmem>>) attributes {dimension_semantics = [#tpu.dimension_semantics<parallel>], iteration_bounds = array<i64: 2>, scalar_prefetch = 0 : i64, scratch_operands = 0 : i64, tpu.core_type = #tpu.core_type<tc>, window_params = [{transform_indices = @transform_0, window_bounds = array<i64: 64, 128>}, {pipeline_mode = #tpu.pipeline_mode<synchronous>, transform_indices = @transform_1, window_bounds = array<i64: 128, 256>}, {pipeline_mode = #tpu.pipeline_mode<synchronous>, transform_indices = @transform_2, window_bounds = array<i64: 1, 256>}, {pipeline_mode = #tpu.pipeline_mode<synchronous>, transform_indices = @transform_3, window_bounds = array<i64: 256, 128>}, {pipeline_mode = #tpu.pipeline_mode<synchronous>, transform_indices = @transform_4, window_bounds = array<i64: 1, 128>}, {transform_indices = @transform_5, window_bounds = array<i64: 64, 128>}]} {
    %c0 = arith.constant 0 : index
    %c0_0 = arith.constant 0 : index
    %0 = vector.load %arg1[%c0, %c0_0] : memref<64x128xbf16, #tpu.memory_space<vmem>>, vector<64x128xbf16>
    %c0_1 = arith.constant 0 : index
    %c0_2 = arith.constant 0 : index
    %1 = vector.load %arg2[%c0_1, %c0_2] : memref<128x256xbf16, #tpu.memory_space<vmem>>, vector<128x256xbf16>
    %cst = arith.constant dense<0.000000e+00> : vector<64x256xf32>
    %2 = tpu.matmul %0, %1, %cst {dimension_numbers = #tpu.dot_dimension_numbers<[1], [0], [0], [1], [0, 0, 1, 1], [], []>} : vector<64x128xbf16>, vector<128x256xbf16>, vector<64x256xf32> -> vector<64x256xf32>
    %c0_3 = arith.constant 0 : index
    %c0_4 = arith.constant 0 : index
    %3 = vector.load %arg3[%c0_3, %c0_4] : memref<1x256xbf16, #tpu.memory_space<vmem>>, vector<1x256xbf16>
    %4 = arith.extf %3 : vector<1x256xbf16> to vector<1x256xf32>
    %5 = vector.broadcast %4 : vector<1x256xf32> to vector<64x256xf32>
    %6 = arith.addf %2, %5 : vector<64x256xf32>
    %cst_5 = arith.constant 5.000000e-01 : f32
    %7 = vector.broadcast %cst_5 : f32 to vector<64x256xf32>
    %8 = arith.mulf %7, %6 : vector<64x256xf32>
    %cst_6 = arith.constant 0.707106769 : f32
    %9 = vector.broadcast %cst_6 : f32 to vector<64x256xf32>
    %10 = arith.mulf %6, %9 : vector<64x256xf32>
    %11 = math.erf %10 : vector<64x256xf32>
    %cst_7 = arith.constant 1.000000e+00 : f32
    %12 = vector.broadcast %cst_7 : f32 to vector<64x256xf32>
    %13 = arith.addf %12, %11 : vector<64x256xf32>
    %14 = arith.mulf %8, %13 : vector<64x256xf32>
    %15 = arith.truncf %14 : vector<64x256xf32> to vector<64x256xbf16>
    %c0_8 = arith.constant 0 : index
    %c0_9 = arith.constant 0 : index
    %16 = vector.load %arg4[%c0_8, %c0_9] : memref<256x128xbf16, #tpu.memory_space<vmem>>, vector<256x128xbf16>
    %cst_10 = arith.constant dense<0.000000e+00> : vector<64x128xf32>
    %17 = tpu.matmul %15, %16, %cst_10 {dimension_numbers = #tpu.dot_dimension_numbers<[1], [0], [0], [1], [0, 0, 1, 1], [], []>} : vector<64x256xbf16>, vector<256x128xbf16>, vector<64x128xf32> -> vector<64x128xf32>
    %c0_11 = arith.constant 0 : index
    %c0_12 = arith.constant 0 : index
    %18 = vector.load %arg5[%c0_11, %c0_12] : memref<1x128xbf16, #tpu.memory_space<vmem>>, vector<1x128xbf16>
    %19 = arith.extf %18 : vector<1x128xbf16> to vector<1x128xf32>
    %20 = vector.broadcast %19 : vector<1x128xf32> to vector<64x128xf32>
    %21 = arith.addf %17, %20 : vector<64x128xf32>
    %22 = arith.truncf %21 : vector<64x128xf32> to vector<64x128xbf16>
    %c0_13 = arith.constant 0 : index
    %c0_14 = arith.constant 0 : index
    %23 = vector.load %arg6[%c0_13, %c0_14] : memref<64x128xbf16, #tpu.memory_space<vmem>>, vector<64x128xbf16>
    tpu.vector_store %arg6[%c0_13, %c0_14], %22 {strides = array<i32>} : memref<64x128xbf16, #tpu.memory_space<vmem>>, vector<64x128xbf16>,
    return
  }
  func.func @transform_0(%arg0: i32) -> (i32, i32) {
    %c0_i32 = arith.constant 0 : i32
    %c0_i32_0 = arith.constant 0 : i32
    return %arg0, %c0_i32 : i32, i32
  }
  func.func @transform_1(%arg0: i32) -> (i32, i32) {
    %c0_i32 = arith.constant 0 : i32
    %c0_i32_0 = arith.constant 0 : i32
    %c0_i32_1 = arith.constant 0 : i32
    return %c0_i32, %c0_i32_0 : i32, i32
  }
  func.func @transform_2(%arg0: i32) -> (i32, i32) {
    %c0_i32 = arith.constant 0 : i32
    %c0_i32_0 = arith.constant 0 : i32
    %c0_i32_1 = arith.constant 0 : i32
    return %c0_i32, %c0_i32_0 : i32, i32
  }
  func.func @transform_3(%arg0: i32) -> (i32, i32) {
    %c0_i32 = arith.constant 0 : i32
    %c0_i32_0 = arith.constant 0 : i32
    %c0_i32_1 = arith.constant 0 : i32
    return %c0_i32, %c0_i32_0 : i32, i32
  }
  func.func @transform_4(%arg0: i32) -> (i32, i32) {
    %c0_i32 = arith.constant 0 : i32
    %c0_i32_0 = arith.constant 0 : i32
    %c0_i32_1 = arith.constant 0 : i32
    return %c0_i32, %c0_i32_0 : i32, i32
  }
  func.func @transform_5(%arg0: i32) -> (i32, i32) {
    %c0_i32 = arith.constant 0 : i32
    %c0_i32_0 = arith.constant 0 : i32
    return %arg0, %c0_i32 : i32, i32
  }
}

</mosaic_0001>

<bundles_post_ra>
// kernel: mlp_forward.1
= control target key start
LH: loop header
LB: loop body
LE: loop exit
PB: predicated region body
PF: predicated region fallthrough
CT: control target
= control target key end

     0   :  { %10 = vsyncpa [#allocation3], 0  ;;  %s1711_s0 = inlined_call_operand.hbm [shape: bf16[128,128], index: 0, kind: input, shape index: {}]   ;;  %s1712_s1 = inlined_call_operand.hbm [shape: bf16[128,256], index: 1, kind: input, shape index: {}]   ;;  %s1713_s2 = inlined_call_operand.vmem [shape: bf16[1,256], index: 2, kind: input, shape index: {}]   ;;  %s1714_s3 = inlined_call_operand.hbm [shape: bf16[256,128], index: 3, kind: input, shape index: {}]   ;;  %s1715_s4 = inlined_call_operand.vmem [shape: bf16[1,128], index: 4, kind: input, shape index: {}]   ;;  %s1716_s5 = inlined_call_operand.hbm [shape: bf16[128,128], index: 5, kind: output, shape index: {}]  }
   0x1   :  { %12 = vsyncpa [#allocation3 + $0x1], 0 }
   0x2   :  { %13 = vsyncpa [#allocation6], 0 }
   0x3   :  { %14 = vsyncpa [#allocation4], 0 }
   0x4   :  { %16 = vsyncpa [#allocation4 + $0x1], 0  ;;  %s1414_s18 = smov 0   ;;  %s1416_s19 = smov 0  }
   0x5   :  { %s1418_s20 = smov 0   ;;  %s1420_s21 = smov 0  }
   0x6 LB: > { %s1435_s22 = sadd.s32 4294967295, %s1371_s21   ;;  %s930_s23 = sadd.s32 4294967294, %s1371_s21   ;;  %s1371_s21 = sphi %s1420_s21, %s1736_s21   ;;  %s1367_s20 = sphi %s1418_s20, %s1735_s20   ;;  %s1363_s19 = sphi %s1416_s19, %s1734_s19   ;;  %s1359_s18 = sphi %s1414_s18, %s1733_s18  }
   0x7   : > { %p42_p0 = scmp.ne.s32.totalorder %s1363_s19, %s1359_s18  ;;  %p1717_p1 = scmp.eq.s32.totalorder %s1435_s22, 0 }
   0x8   : > { %p156_p3 = scmp.eq.s32.totalorder %s930_s23, 1  ;;  %p931_p5 = scmp.ge.s32.totalorder %s1371_s21, 1 }
   0x9   : > { %p1444_p4 = por %p1717_p1, %p42_p0  ;;  %p163_p7 = scmp.lt.s32.totalorder %s1371_s21, 3 }
   0xa   : > { %p1449_p6 = por %p156_p3, %p42_p0  ;;  %s1373_s27 = smov [#allocation5]  }
   0xb   : > { %s1720_s24 = scalar_select %p1444_p4, 1, 0 }
   0xc   : > { %s1721_s25 = scalar_select %p1449_p6, 1, 0 }
   0xd   : > { %p1454_p8 = pnand %p931_p5, %p163_p7  ;;  %s175_s28 = sshll.u32 %s1373_s27, 4  ;;  %s1458_s28 = int_to_ptr.vmem [resolvable:$true] %s175_s28 }
   0xe   : > { %s1374_s30 = smov [#allocation7]   ;;  %s1215_s9 = scalar_lea.hbm %s1712_s1, 2048 }
   0xf   : > { %p1077_p9 = pneg %p1454_p8  ;;  %s191_s6 = sshll.u32 %s1374_s30, 4  ;;  %s1469_s6 = int_to_ptr.vmem [resolvable:$true] %s191_s6 }
  0x10   : > { %p1216_p12 = scmp.ne.s32.totalorder %s1712_s1, %s1215_s9  ;;  %p1222_p5 = scmp.lt.u32.totalorder %s1215_s9, %s1712_s1 }
  0x11   : > { %p1465_p11 = pnand %p1077_p9, %p1717_p1 }
  0x13   : > { %p1217_p13 = pneg %p1465_p11 }
  0x15   : > { %p1218_p0 = pnand %p1217_p13, %p1216_p12 }
  0x17   : > { %p1219_p3 = pneg %p1218_p0 }
  0x19   : > { %p1224_p7 = pnand %p1222_p5, %p1219_p3 }
  0x1b   : > { %1227 = shalt.err (!%p1224_p7)
}
  0x1c   : > { %s1228_s14 = scalar_lea.vmem %s1458_s28, 2048  ;;  %p1236_p2 = scmp.lt.s32.totalorder %s1458_s28, %s1458_s28 }
  0x1d   : > { %p1229_p9 = scmp.ne.s32.totalorder %s1458_s28, %s1228_s14  ;;  %p1237_p12 = scmp.lt.s32.totalorder %s1228_s14, %s1228_s14 }
  0x1f   : > { %p1231_p10 = pnand %p1229_p9, %p1217_p13  ;;  %p1238_p0 = por %p1237_p12, %p1236_p2 }
  0x21   : > { %p1232_p1 = pneg %p1231_p10 }
  0x23   : > { %p1239_p6 = pnand %p1238_p0, %p1232_p1 }
  0x25   : > { %1242 = shalt.err (!%p1239_p6)
}
  0x26   : > { %s1375_s15 = smov 128   ;;  %s1376_s16 = smov 8  }
  0x27   : > { %1080 = dma.hbm_to_vmem [thread:$0]  (!%p1465_p11), %s1712_s1, 2048, %s1458_s28, [#allocation6], %s1375_s15, %s1375_s15, %s1376_s16  }
  0x28   : > { %s1243_s7 = scalar_lea.hbm %s1714_s3, 2048 }
  0x29   : > { %p1244_p2 = scmp.ne.s32.totalorder %s1714_s3, %s1243_s7  ;;  %p1250_p10 = scmp.lt.u32.totalorder %s1243_s7, %s1714_s3 }
  0x2b   : > { %p1246_p1 = pnand %p1244_p2, %p1217_p13 }
  0x2d   : > { %p1247_p6 = pneg %p1246_p1 }
  0x2f   : > { %p1252_p3 = pnand %p1250_p10, %p1247_p6 }
  0x31   : > { %1255 = shalt.err (!%p1252_p3)
}
  0x32   : > { %s1256_s28 = scalar_lea.vmem %s1469_s6, 2048  ;;  %p1264_p12 = scmp.lt.s32.totalorder %s1469_s6, %s1469_s6 }
  0x33   : > { %p1257_p5 = scmp.ne.s32.totalorder %s1469_s6, %s1256_s28  ;;  %p1265_p0 = scmp.lt.s32.totalorder %s1256_s28, %s1256_s28 }
  0x35   : > { %p1259_p7 = pnand %p1257_p5, %p1217_p13  ;;  %p1266_p2 = por %p1265_p0, %p1264_p12 }
  0x37   : > { %p1260_p9 = pneg %p1259_p7 }
  0x39   : > { %p1267_p1 = pnand %p1266_p2, %p1260_p9 }
  0x3b   : > { %1270 = shalt.err (!%p1267_p1)
}
  0x3c   : > { %s1377_s12 = smov 64   ;;  %s1378_s13 = smov 4  }
  0x3d   : > { %1083 = dma.hbm_to_vmem [thread:$0]  (!%p1465_p11), %s1714_s3, 2048, %s1469_s6, [#allocation6], %s1377_s12, %s1377_s12, %s1378_s13  }
  0x3e   : > { %s1527_s16 = sadd.s32 1, %s1371_s21   ;;  %s29_s23 = sadd.s32 1, %s1367_s20 }
  0x3f   : > { %s26_s17 = ssub.s32 %s1371_s21, %s1527_s16  ;;  %p36_p6 = scmp.ne.s32.totalorder %s1367_s20, %s1363_s19 }
  0x40   : > { %p27_p13 = scmp.eq.s32.totalorder %s26_s17, 0  ;;  %p37_p10 = scmp.eq.s32.totalorder %s1371_s21, 0 }
  0x41   : > { %p1724_p5 = scmp.eq.s32.totalorder %s1435_s22, 1  ;;  %p1094_p9 = scmp.lt.s32.totalorder %s1371_s21, 2 }
  0x42   : > { %s1536_s27 = scalar_select %p27_p13, %s1367_s20, %s29_s23  }
  0x43   : > { %p38_p3 = por %p37_p10, %p36_p6  ;;  %p1540_p7 = por %p1724_p5, %p36_p6 }
  0x44   : > { %s208_s30 = sand.u32 1, %s1367_s20   ;;  %s992_s6 = sshll.u32 %s1371_s21, 9 }
  0x45   : > { %s1725_s29 = scalar_select %p1540_p7, 1, 0 }
  0x46   : > { %s935_s7 = sshll.u32 %s208_s30, 5  ;;  %s1550_s10 = scalar_lea.hbm %s1711_s0, %s992_s6 }
  0x47   : > { %s212_s11 = scalar_lea.vmem [#allocation2], %s935_s7  ;;  %p1554_p11 = pnand %p1094_p9, %p38_p3 }
  0x48   : > { %s219_s28 = sshll.u32 %s212_s11, 4  ;;  %s1558_s15 = scalar_lea.sflag [#allocation3], %s208_s30  ;;  %s1552_s28 = int_to_ptr.vmem [resolvable:$true] %s219_s28 }
  0x49   : > { %s1271_s17 = scalar_lea.hbm %s1550_s10, 512  ;;  %p1273_p0 = pneg %p1554_p11 }
  0x4a   : > { %p1272_p12 = scmp.ne.s32.totalorder %s1550_s10, %s1271_s17  ;;  %s1276_s6 = scalar_lea.hbm %s1711_s0, 1024 }
  0x4b   : > { %p1277_p13 = scmp.lt.u32.totalorder %s1550_s10, %s1711_s0  ;;  %p1278_p6 = scmp.lt.u32.totalorder %s1276_s6, %s1271_s17 }
  0x4c   : > { %p1274_p2 = pnand %p1273_p0, %p1272_p12  ;;  %p1280_p3 = scmp.lt.u32.totalorder %s1271_s17, %s1550_s10 }
  0x4d   : > { %p1279_p10 = por %p1278_p6, %p1277_p13 }
  0x4e   : > { %p1275_p1 = pneg %p1274_p2 }
  0x4f   : > { %p1281_p5 = por %p1280_p3, %p1279_p10 }
  0x51   : > { %p1282_p9 = pnand %p1281_p5, %p1275_p1 }
  0x53   : > { %1285 = shalt.err (!%p1282_p9)
}
  0x54   : > { %s1286_s30 = scalar_lea.vmem %s1552_s28, 512  ;;  %s1379_s11 = smov [#allocation2]  }
  0x55   : > { %p1287_p12 = scmp.ne.s32.totalorder %s1552_s28, %s1286_s30  ;;  %s1291_s23 = sshll.u32 %s1379_s11, 4  ;;  %s1292_s23 = int_to_ptr.vmem [resolvable:$false] %s1291_s23 }
  0x56   : > { %s1293_s7 = scalar_lea.vmem %s1292_s23, 1024  ;;  %p1294_p4 = scmp.lt.s32.totalorder %s1552_s28, %s1292_s23 }
  0x57   : > { %p1289_p2 = pnand %p1287_p12, %p1273_p0  ;;  %p1295_p13 = scmp.lt.s32.totalorder %s1293_s7, %s1286_s30 }
  0x59   : > { %p1290_p7 = pneg %p1289_p2  ;;  %p1296_p6 = por %p1295_p13, %p1294_p4 }
  0x5b   : > { %p1297_p10 = pnand %p1296_p6, %p1290_p7 }
  0x5d   : > { %1300 = shalt.err (!%p1297_p10)
}
  0x5e   : > { %1087 = dma.hbm_to_vmem [thread:$0]  (!%p1554_p11), %s1550_s10, 512, %s1552_s28, %s1558_s15, %s1377_s12, %s1377_s12, %s1378_s13  }
  0x5f   : > { %231 = sbr.rel (%p1454_p8) target bundleno = 636 (0x27c), region = 40  ;;  %s1592_s17 = sand.u32 (!%p1454_p8), 1, %s1363_s19  }
  0x60   : > { %s939_s6 = sshll.u32 (!%p1454_p8), %s1592_s17, 5  ;;  %s234_s8 = scalar_lea.sflag (!%p1454_p8), [#allocation3], %s1592_s17 }
  0x61   : > { %s1598_s14 = scalar_lea.vmem (!%p1454_p8), [#allocation2], %s939_s6  ;;  %p1727_p4 = scmp.ne.s32.totalorder (!%p1454_p8), %s1720_s24, 0 }
  0x66   : > { %1346 = dma.done.wait (%p1727_p4), %s234_s8, 512  }
  0x67   : > { %1348 = vsyncadd (%p1727_p4), %s234_s8, 4294966784  ;;  %p1728_p7 = scmp.eq.s32.totalorder %s1435_s22, 0 }
  0x69   : > { %1350 = dma.done.wait (%p1728_p7), [#allocation6], 4096   ;;  %p1729_p8 = pmov %p1728_p7 }
  0x6a   : > { %v1380_v0 = vmov 0   ;;  %v1139_v1 = vld [vmem:[#allocation5 + $0x4] ss:$8 sps:$4 sm:$0xff]   ;;  %v1141_v2 = vld [vmem:[#allocation5] ss:$8 sps:$4 sm:$0xff]   ;;  %v1165_v23 = vld [vmem:[%s1598_s14 + $0x10] sm:$0xff]   ;;  %v302_v37 = vlaneseq }
  0x6b   : > { %1352 = vsyncadd (%p1729_p8), [#allocation6], 4294963200  ;;  %456 = vmatprep.mubr.bf16.mxu0 %v1380_v0  ;;  %424 = vmatprep.subr.bf16.mxu0 %v1139_v1  ;;  %v1142_v3 = vld [vmem:[#allocation5 + $0x14] ss:$8 sps:$4 sm:$0xff]   ;;  %v1144_v4 = vld [vmem:[#allocation5 + $0x10] ss:$8 sps:$4 sm:$0xff]  }
  0x6c   : > { %425 = vmatpush1.bf16.msra.mxu0 %v1141_v2  ;;  %v1145_v5 = vld [vmem:[#allocation5 + $0x24] ss:$8 sps:$4 sm:$0xff]   ;;  %v1147_v6 = vld [vmem:[#allocation5 + $0x20] ss:$8 sps:$4 sm:$0xff]   ;;  %v1148_v7 = vld [vmem:[#allocation5 + $0x34] ss:$8 sps:$4 sm:$0xff]  }
  0x6d   : > { %426 = vmatprep.subr.bf16.mxu0 %v1142_v3  ;;  %v1150_v8 = vld [vmem:[#allocation5 + $0x30] ss:$8 sps:$4 sm:$0xff]   ;;  %v1151_v9 = vld [vmem:[#allocation5 + $0x44] ss:$8 sps:$4 sm:$0xff]   ;;  %v1153_v10 = vld [vmem:[#allocation5 + $0x40] ss:$8 sps:$4 sm:$0xff]  }
  0x6e   : > { %v1154_v11 = vld [vmem:[#allocation5 + $0x54] ss:$8 sps:$4 sm:$0xff]   ;;  %v1167_v12 = vld [vmem:[#allocation7 + $0x40] sm:$0xff]   ;;  %v1156_v14 = vld [vmem:[#allocation5 + $0x50] ss:$8 sps:$4 sm:$0xff]   ;;  %v303_v38 = vshrl.u32 %v302_v37, 7 }
  0x6f   : > { %v1168_v13 = vld [vmem:[#allocation7] sm:$0xff]   ;;  %1025 = vmatprep.subr.bf16.mxu1 %v1167_v12  ;;  %v1169_v15 = vld [vmem:[#allocation7 + $0x48] sm:$0xff]   ;;  %v1160_v19 = vld [vmem:[#allocation5 + $0x74] ss:$8 sps:$4 sm:$0xff]   ;;  %s1654_s10 = scalar_lea.vmem [#allocation8], %s939_s6  ;;  %s1001_s15 = sshll.u32 %s1435_s22, 9 }
  0x70   : > { %427 = vmatpush1.bf16.msra.mxu0 %v1144_v4  ;;  %v1157_v16 = vld [vmem:[#allocation5 + $0x64] ss:$8 sps:$4 sm:$0xff]   ;;  %1026 = vmatpush3.bf16.msra.mxu1 %v1168_v13  ;;  %v1159_v18 = vld [vmem:[#allocation5 + $0x60] ss:$8 sps:$4 sm:$0xff]   ;;  %v1162_v20 = vld [vmem:[#allocation5 + $0x70] ss:$8 sps:$4 sm:$0xff]   ;;  %s1666_s11 = scalar_lea.hbm %s1716_s5, %s1001_s15 }
  0x71   : > { %428 = vmatprep.subr.bf16.mxu0 %v1145_v5  ;;  %v1170_v17 = vld [vmem:[#allocation7 + $0x8] sm:$0xff]   ;;  %1027 = vmatprep.subr.bf16.mxu1 %v1169_v15  ;;  %v1163_v21 = vld [vmem:[%s1598_s14] sm:$0xff]   ;;  %v1166_v24 = vld [vmem:[%s1598_s14 + $0x18] sm:$0xff]   ;;  %v1615_v41 = vsub.s32 0, %v303_v38  ;;  %v308_v42 = vsub.s32 2, %v303_v38  ;;  %s838_s28 = sshll.u32 %s1654_s10, 4  ;;  %s1661_s28 = int_to_ptr.vmem [resolvable:$true] %s838_s28 }
  0x72   : > { %v1164_v22 = vld [vmem:[%s1598_s14 + $0x8] sm:$0xff]   ;;  %v1171_v25 = vld [vmem:[#allocation7 + $0x50] sm:$0xff]   ;;  %v1173_v27 = vld [vmem:[#allocation7 + $0x58] sm:$0xff]   ;;  %s825_s23 = scalar_lea.sflag [#allocation4], %s1592_s17  ;;  %s1301_s7 = scalar_lea.vmem %s1661_s28, 512 }
  0x73   : > { %v1172_v26 = vld [vmem:[#allocation7 + $0x10] sm:$0xff]   ;;  %v1174_v28 = vld [vmem:[#allocation7 + $0x18] sm:$0xff]   ;;  %v1175_v29 = vld [vmem:[#allocation7 + $0x60] sm:$0xff]   ;;  %p1302_p11 = scmp.ne.s32.totalorder %s1661_s28, %s1301_s7  ;;  %p1730_p0 = scmp.ne.s32.totalorder %s1725_s29, 0 }
  0x74   : > { %429 = vmatpush1.bf16.msra.mxu0 %v1147_v6  ;;  %1028 = vmatpush3.bf16.msra.mxu1 %v1170_v17  ;;  %v1176_v30 = vld [vmem:[#allocation7 + $0x20] sm:$0xff]   ;;  %v1177_v31 = vld [vmem:[#allocation7 + $0x68] sm:$0xff]   ;;  %v1179_v33 = vld [vmem:[#allocation7 + $0x70] sm:$0xff]   ;;  %s1381_s22 = smov [#allocation8]  }
  0x75   : > { %430 = vmatprep.subr.bf16.mxu0 %v1148_v7  ;;  %1029 = vmatprep.subr.bf16.mxu1 %v1171_v25  ;;  %v1178_v32 = vld [vmem:[#allocation7 + $0x28] sm:$0xff]   ;;  %v1180_v34 = vld [vmem:[#allocation7 + $0x30] sm:$0xff]   ;;  %v1181_v35 = vld [vmem:[#allocation7 + $0x78] sm:$0xff]   ;;  %p1303_p1 = pnand %p1302_p11, %p1730_p0  ;;  %s1305_s6 = sshll.u32 %s1381_s22, 4  ;;  %s1306_s6 = int_to_ptr.vmem [resolvable:$false] %s1305_s6 }
  0x76   : > { %v1182_v36 = vld [vmem:[#allocation7 + $0x38] sm:$0xff]   ;;  %v299_v39 = vld [vmem:[%s1713_s2] sm:$0x3]  ;;  %s1307_s8 = scalar_lea.vmem %s1306_s6, 1024  ;;  %p1308_p5 = scmp.lt.s32.totalorder %s1661_s28, %s1306_s6 }
  0x77   : > { %v300_v40 = vunpack.c.l.bf16 %v299_v39  ;;  %p1304_p3 = pneg %p1303_p1  ;;  %p1309_p9 = scmp.lt.s32.totalorder %s1307_s8, %s1301_s7 }
  0x78   : > { %431 = vmatpush1.bf16.msra.mxu0 %v1150_v8  ;;  %1030 = vmatpush3.bf16.msra.mxu1 %v1172_v26 }
  0x79   : > { %432 = vmatprep.subr.bf16.mxu0 %v1151_v9  ;;  %1031 = vmatprep.subr.bf16.mxu1 %v1173_v27  ;;  %v305_v43 = vrot.slane %v300_v40, %v1615_v41  ;;  %v309_v44 = vrot.slane %v300_v40, %v308_v42  ;;  %p1310_p12 = por %p1309_p9, %p1308_p5 }
  0x7b   : > { %v1619_v45 = vrot.slane %v305_v43, %v1615_v41  ;;  %v1622_v46 = vrot.slane %v309_v44, %v1615_v41  ;;  %p1311_p2 = pnand %p1310_p12, %p1304_p3 }
  0x7c   : > { %433 = vmatpush1.bf16.msra.mxu0 %v1153_v10  ;;  %1032 = vmatpush3.bf16.msra.mxu1 %v1174_v28 }
  0x7d   : > { %434 = vmatprep.subr.bf16.mxu0 %v1154_v11  ;;  %1033 = vmatprep.subr.bf16.mxu1 %v1175_v29 }
  0x80   : > { %435 = vmatpush1.bf16.msra.mxu0 %v1156_v14  ;;  %1034 = vmatpush3.bf16.msra.mxu1 %v1176_v30 }
  0x81   : > { %436 = vmatprep.subr.bf16.mxu0 %v1157_v16  ;;  %1035 = vmatprep.subr.bf16.mxu1 %v1177_v31 }
  0x84   : > { %437 = vmatpush1.bf16.msra.mxu0 %v1159_v18  ;;  %1036 = vmatpush3.bf16.msra.mxu1 %v1178_v32 }
  0x85   : > { %438 = vmatprep.subr.bf16.mxu0 %v1160_v19  ;;  %1037 = vmatprep.subr.bf16.mxu1 %v1179_v33 }
  0x88   : > { %439 = vmatpush1.bf16.msra.mxu0 %v1162_v20  ;;  %1038 = vmatpush3.bf16.msra.mxu1 %v1180_v34 }
  0x89   : > { %1039 = vmatprep.subr.bf16.mxu1 %v1181_v35 }
  0x8b   : > { %457 = vmatmul.mubr.bf16.vlgmr.msra.gmra.mrb[0].mxu0 %v1163_v21 }
  0x8c   : > { %466 = vmatprep.mubr.bf16.mxu0 %v1380_v0  ;;  %1040 = vmatpush3.bf16.msra.mxu1 %v1182_v36 }
  0x93   : > { %467 = vmatmul.mubr.bf16.gmra.mrb[4].mxu0 %v1164_v22 }
  0x94   : > { %476 = vmatprep.mubr.bf16.mxu0 %v1380_v0 }
  0x9b   : > { %477 = vmatmul.mubr.bf16.gmra.mrb[8].mxu0 %v1165_v23 }
  0x9c   : > { %486 = vmatprep.mubr.bf16.mxu0 %v1380_v0 }
  0xa3   : > { %487 = vmatmul.mubr.bf16.gmra.mrb[12].mxu0 %v1166_v24 }
 0x15e   : > { %v458_v47 = vpop.f32.mrb[0].mxu0 }
 0x15f   : > { %v459_v48 = vadd.f32 %v458_v47, %v1619_v45  ;;  %v460_v49 = vpop.f32.mrb[1].mxu0 }
 0x160   : > { %v461_v50 = vadd.f32 %v460_v49, %v1622_v46  ;;  %v462_v51 = vpop.f32.mrb[2].mxu0 }
 0x161   : > { %v513_v52 = vmul.f32 0.70710677, %v459_v48  ;;  %v463_v53 = vadd.f32 %v462_v51, %v1619_v45  ;;  %v464_v54 = vpop.f32.mrb[3].mxu0  ;;  %v497_v11 = vmul.f32 0.5, %v459_v48 }
 0x162   : > { %v514_v55 = vmul.f32 0.70710677, %v461_v50  ;;  %v465_v56 = vadd.f32 %v464_v54, %v1622_v46  ;;  %v498_v21 = vmul.f32 0.5, %v461_v50 }
 0x163   : > { %1183 = verf.f32 %v513_v52  ;;  %v515_v57 = vmul.f32 0.70710677, %v463_v53  ;;  %v499_v16 = vmul.f32 0.5, %v463_v53 }
 0x164   : > { %1185 = verf.f32 %v514_v55  ;;  %v516_v58 = vmul.f32 0.70710677, %v465_v56  ;;  %v500_v27 = vmul.f32 0.5, %v465_v56 }
 0x165   : > { %1187 = verf.f32 %v515_v57 }
 0x166   : > { %1189 = verf.f32 %v516_v58  ;;  %v468_v59 = vpop.f32.mrb[4].mxu0 }
 0x167   : > { %v469_v60 = vadd.f32 %v468_v59, %v1619_v45  ;;  %v470_v61 = vpop.f32.mrb[5].mxu0 }
 0x168   : > { %v471_v62 = vadd.f32 %v470_v61, %v1622_v46  ;;  %v472_v63 = vpop.f32.mrb[6].mxu0 }
 0x169   : > { %v517_v0 = vmul.f32 0.70710677, %v469_v60  ;;  %v473_v1 = vadd.f32 %v472_v63, %v1619_v45  ;;  %v474_v2 = vpop.f32.mrb[7].mxu0  ;;  %v501_v49 = vmul.f32 0.5, %v469_v60 }
 0x16a   : > { %v518_v3 = vmul.f32 0.70710677, %v471_v62  ;;  %v475_v4 = vadd.f32 %v474_v2, %v1622_v46  ;;  %v502_v54 = vmul.f32 0.5, %v471_v62 }
 0x16b   : > { %1191 = verf.f32 %v517_v0  ;;  %v519_v5 = vmul.f32 0.70710677, %v473_v1  ;;  %v503_v50 = vmul.f32 0.5, %v473_v1 }
 0x16c   : > { %1193 = verf.f32 %v518_v3  ;;  %v520_v6 = vmul.f32 0.70710677, %v475_v4  ;;  %v504_v55 = vmul.f32 0.5, %v475_v4 }
 0x16d   : > { %v1184_v7 = vpop.eup %1183  ;;  %1195 = verf.f32 %v519_v5 }
 0x16e   : > { %v1186_v8 = vpop.eup %1185  ;;  %1197 = verf.f32 %v520_v6  ;;  %v478_v9 = vpop.f32.mrb[8].mxu0  ;;  %v545_v12 = vadd.f32 1.0, %v1184_v7 }
 0x16f   : > { %v1188_v10 = vpop.eup %1187  ;;  %v1633_v13 = vadd.f32 %v478_v9, %v1619_v45  ;;  %v480_v14 = vpop.f32.mrb[9].mxu0  ;;  %v546_v20 = vadd.f32 1.0, %v1186_v8 }
 0x170   : > { %v1190_v15 = vpop.eup %1189  ;;  %v547_v17 = vadd.f32 1.0, %v1188_v10  ;;  %v1636_v18 = vadd.f32 %v480_v14, %v1622_v46  ;;  %v482_v19 = vpop.f32.mrb[10].mxu0  ;;  %v561_v30 = vmul.f32 %v545_v12, %v497_v11 }
 0x171   : > { %v521_v22 = vmul.f32 0.70710677, %v1633_v13  ;;  %v483_v23 = vadd.f32 %v482_v19, %v1619_v45  ;;  %v484_v24 = vpop.f32.mrb[11].mxu0  ;;  %v548_v25 = vadd.f32 1.0, %v1190_v15  ;;  %v562_v33 = vmul.f32 %v546_v20, %v498_v21 }
 0x172   : > { %v563_v26 = vmul.f32 %v547_v17, %v499_v16  ;;  %v522_v28 = vmul.f32 0.70710677, %v1636_v18  ;;  %v485_v29 = vadd.f32 %v484_v24, %v1622_v46 }
 0x173   : > { %1199 = verf.f32 %v521_v22  ;;  %v523_v31 = vmul.f32 0.70710677, %v483_v23  ;;  %v564_v34 = vmul.f32 %v548_v25, %v500_v27  ;;  %v507_v12 = vmul.f32 0.5, %v483_v23 }
 0x174   : > { %1201 = verf.f32 %v522_v28  ;;  %v524_v32 = vmul.f32 0.70710677, %v485_v29  ;;  %v577_v36 = vpack.c.bf16 %v563_v26, %v561_v30  ;;  %v508_v15 = vmul.f32 0.5, %v485_v29 }
 0x175   : > { %v1192_v35 = vpop.eup %1191  ;;  %1203 = verf.f32 %v523_v31  ;;  %v578_v40 = vpack.c.bf16 %v564_v34, %v562_v33 }
 0x176   : > { %v1194_v37 = vpop.eup %1193  ;;  %v549_v38 = vadd.f32 1.0, %v1192_v35  ;;  %1205 = verf.f32 %v524_v32  ;;  %v488_v39 = vpop.f32.mrb[12].mxu0 }
 0x177   : > { %v1196_v42 = vpop.eup %1195  ;;  %v550_v43 = vadd.f32 1.0, %v1194_v37  ;;  %v489_v44 = vadd.f32 %v488_v39, %v1619_v45  ;;  %v490_v47 = vpop.f32.mrb[13].mxu0  ;;  %751 = vmatprep.mubr.bf16.mxu1 %v578_v40  ;;  %v617_v40 = vld [vmem:[%s1715_s4] sm:$0x1] }
 0x178   : > { %v1198_v48 = vpop.eup %1197  ;;  %v551_v51 = vadd.f32 1.0, %v1196_v42  ;;  %v491_v52 = vadd.f32 %v490_v47, %v1622_v46  ;;  %v492_v53 = vpop.f32.mrb[14].mxu0  ;;  %752 = vmatmul.mubr.bf16.vlgmr.msra.gmra.mrb[0].mxu1 %v577_v36  ;;  %v565_v59 = vmul.f32 %v549_v38, %v501_v49  ;;  %v618_v42 = vunpack.c.l.bf16 %v617_v40 }
 0x179   : > { %v552_v56 = vadd.f32 1.0, %v1198_v48  ;;  %v525_v57 = vmul.f32 0.70710677, %v489_v44  ;;  %v494_v58 = vpop.f32.mrb[15].mxu0  ;;  %v493_v0 = vadd.f32 %v492_v53, %v1619_v45  ;;  %v566_v2 = vmul.f32 %v550_v43, %v502_v54 }
 0x17a   : > { %v567_v61 = vmul.f32 %v551_v51, %v503_v50  ;;  %v526_v63 = vmul.f32 0.70710677, %v491_v52  ;;  %v495_v60 = vadd.f32 %v494_v58, %v1622_v46  ;;  %v505_v45 = vmul.f32 0.5, %v1633_v13 }
 0x17b   : > { %v568_v3 = vmul.f32 %v552_v56, %v504_v55  ;;  %1207 = verf.f32 %v525_v57  ;;  %v527_v1 = vmul.f32 0.70710677, %v493_v0  ;;  %v506_v46 = vmul.f32 0.5, %v1636_v18 }
 0x17c   : > { %1209 = verf.f32 %v526_v63  ;;  %v579_v5 = vpack.c.bf16 %v567_v61, %v565_v59  ;;  %v528_v62 = vmul.f32 0.70710677, %v495_v60  ;;  %v509_v23 = vmul.f32 0.5, %v489_v44 }
 0x17d   : > { %v1200_v6 = vpop.eup %1199  ;;  %v580_v4 = vpack.c.bf16 %v568_v3, %v566_v2  ;;  %1211 = verf.f32 %v527_v1  ;;  %v511_v31 = vmul.f32 0.5, %v493_v0  ;;  %v510_v18 = vmul.f32 0.5, %v491_v52 }
 0x17e   : > { %v1202_v7 = vpop.eup %1201  ;;  %v553_v8 = vadd.f32 1.0, %v1200_v6  ;;  %1213 = verf.f32 %v528_v62  ;;  %v512_v29 = vmul.f32 0.5, %v495_v60  ;;  %v622_v47 = vrot.slane %v618_v42, %v1615_v41 }
 0x17f   : > { %v1204_v9 = vpop.eup %1203  ;;  %v554_v10 = vadd.f32 1.0, %v1202_v7  ;;  %759 = vmatprep.mubr.bf16.mxu1 %v580_v4 }
 0x180   : > { %v1206_v11 = vpop.eup %1205  ;;  %v555_v14 = vadd.f32 1.0, %v1204_v9  ;;  %760 = vmatmul.mubr.bf16.gmra.mrb[4].mxu1 %v579_v5  ;;  %v569_v17 = vmul.f32 %v553_v8, %v505_v45 }
 0x181   : > { %v556_v16 = vadd.f32 1.0, %v1206_v11  ;;  %v570_v20 = vmul.f32 %v554_v10, %v506_v46 }
 0x182   : > { %v571_v19 = vmul.f32 %v555_v14, %v507_v12 }
 0x183   : > { %v572_v21 = vmul.f32 %v556_v16, %v508_v15 }
 0x184   : > { %v581_v22 = vpack.c.bf16 %v571_v19, %v569_v17 }
 0x185   : > { %v1208_v24 = vpop.eup %1207  ;;  %v582_v25 = vpack.c.bf16 %v572_v21, %v570_v20 }
 0x186   : > { %v1210_v26 = vpop.eup %1209  ;;  %v557_v27 = vadd.f32 1.0, %v1208_v24 }
 0x187   : > { %767 = vmatprep.mubr.bf16.mxu1 %v582_v25  ;;  %v1212_v28 = vpop.eup %1211  ;;  %v558_v30 = vadd.f32 1.0, %v1210_v26 }
 0x188   : > { %v1214_v13 = vpop.eup %1213  ;;  %v559_v32 = vadd.f32 1.0, %v1212_v28  ;;  %768 = vmatmul.mubr.bf16.gmra.mrb[8].mxu1 %v581_v22  ;;  %v573_v34 = vmul.f32 %v557_v27, %v509_v23 }
 0x189   : > { %v560_v33 = vadd.f32 1.0, %v1214_v13  ;;  %v574_v36 = vmul.f32 %v558_v30, %v510_v18 }
 0x18a   : > { %v575_v35 = vmul.f32 %v559_v32, %v511_v31 }
 0x18b   : > { %v576_v37 = vmul.f32 %v560_v33, %v512_v29 }
 0x18c   : > { %v583_v38 = vpack.c.bf16 %v575_v35, %v573_v34 }
 0x18d   : > { %v584_v39 = vpack.c.bf16 %v576_v37, %v574_v36 }
 0x18f   : > { %775 = vmatprep.mubr.bf16.mxu1 %v584_v39 }
 0x190   : > { %776 = vmatmul.mubr.bf16.gmra.mrb[12].mxu1 %v583_v38 }
 0x24b   : > { %v1041_v43 = vpop.f32.mrb[0].mxu1 }
 0x24c   : > { %v1042_v44 = vpop.f32.mrb[1].mxu1 }
 0x24d   : > { %v1043_v48 = vadd.f32 %v1042_v44, %v1041_v43  ;;  %v1044_v49 = vpop.f32.mrb[2].mxu1 }
 0x24e   : > { %v1045_v50 = vpop.f32.mrb[3].mxu1 }
 0x24f   : > { %v1046_v51 = vadd.f32 %v1045_v50, %v1044_v49  ;;  %v754_v52 = vadd.f32 %v1043_v48, %v622_v47 }
 0x251   : > { %v757_v53 = vadd.f32 %v1046_v51, %v622_v47 }
 0x253   : > { %v1005_v54 = vpack.c.bf16 %v757_v53, %v754_v52  ;;  %v1047_v55 = vpop.f32.mrb[4].mxu1 }
 0x254   : > { %v1048_v56 = vpop.f32.mrb[5].mxu1 }
 0x255   : > { %1006 = vst [vmem:[%s1654_s10] sm:$0xff] %v1005_v54   ;;  %v1049_v57 = vadd.f32 %v1048_v56, %v1047_v55  ;;  %v1050_v58 = vpop.f32.mrb[6].mxu1 }
 0x256   : > { %v1051_v59 = vpop.f32.mrb[7].mxu1 }
 0x257   : > { %v1052_v61 = vadd.f32 %v1051_v59, %v1050_v58  ;;  %v762_v41 = vadd.f32 %v1049_v57, %v622_v47 }
 0x259   : > { %v765_v63 = vadd.f32 %v1052_v61, %v622_v47 }
 0x25b   : > { %v1010_v0 = vpack.c.bf16 %v765_v63, %v762_v41  ;;  %v1053_v2 = vpop.f32.mrb[8].mxu1 }
 0x25c   : > { %v1054_v3 = vpop.f32.mrb[9].mxu1 }
 0x25d   : > { %1022 = vst [vmem:[%s1654_s10 + $0x8] sm:$0xff] %v1010_v0   ;;  %v1055_v60 = vadd.f32 %v1054_v3, %v1053_v2  ;;  %v1056_v1 = vpop.f32.mrb[10].mxu1 }
 0x25e   : > { %v1057_v5 = vpop.f32.mrb[11].mxu1 }
 0x25f   : > { %v1058_v6 = vadd.f32 %v1057_v5, %v1056_v1  ;;  %v770_v62 = vadd.f32 %v1055_v60, %v622_v47 }
 0x261   : > { %v773_v4 = vadd.f32 %v1058_v6, %v622_v47 }
 0x263   : > { %v1015_v7 = vpack.c.bf16 %v773_v4, %v770_v62  ;;  %v1059_v8 = vpop.f32.mrb[12].mxu1 }
 0x264   : > { %v1060_v9 = vpop.f32.mrb[13].mxu1 }
 0x265   : > { %1023 = vst [vmem:[%s1654_s10 + $0x10] sm:$0xff] %v1015_v7   ;;  %v1061_v10 = vadd.f32 %v1060_v9, %v1059_v8  ;;  %v1062_v11 = vpop.f32.mrb[14].mxu1 }
 0x266   : > { %v1063_v45 = vpop.f32.mrb[15].mxu1 }
 0x267   : > { %v1064_v12 = vadd.f32 %v1063_v45, %v1062_v11  ;;  %v778_v14 = vadd.f32 %v1061_v10, %v622_v47 }
 0x269   : > { %v781_v46 = vadd.f32 %v1064_v12, %v622_v47 }
 0x26b   : > { %v1020_v15 = vpack.c.bf16 %v781_v46, %v778_v14 }
 0x26d   : > { %1024 = vst [vmem:[%s1654_s10 + $0x18] sm:$0xff] %v1020_v15  }
 0x26e   : > { %1314 = shalt.err (!%p1311_p2)
}
 0x26f   : > { %s1315_s14 = scalar_lea.hbm %s1666_s11, 512  ;;  %s1319_s12 = scalar_lea.hbm %s1716_s5, 1024 }
 0x270   : > { %p1316_p13 = scmp.ne.s32.totalorder %s1666_s11, %s1315_s14  ;;  %p1320_p4 = scmp.lt.u32.totalorder %s1666_s11, %s1716_s5 }
 0x271   : > { %p1321_p7 = scmp.lt.u32.totalorder %s1319_s12, %s1315_s14  ;;  %p1323_p11 = scmp.lt.u32.totalorder %s1315_s14, %s1666_s11 }
 0x272   : > { %p1317_p6 = pnand %p1316_p13, %p1730_p0 }
 0x273   : > { %p1322_p8 = por %p1321_p7, %p1320_p4 }
 0x274   : > { %p1318_p10 = pneg %p1317_p6 }
 0x275   : > { %p1324_p1 = por %p1323_p11, %p1322_p8 }
 0x277   : > { %p1325_p3 = pnand %p1324_p1, %p1318_p10 }
 0x279   : > { %1328 = shalt.err (!%p1325_p3)
}
 0x27a   : > { %s1382_s15 = smov 64   ;;  %s1383_s9 = smov 4  }
 0x27b   : > { %1075 = dma.vmem_to_hbm [thread:$0]  (%p1730_p0), %s1661_s28, 512, %s1666_s11, %s825_s23, %s1382_s15, %s1382_s15, %s1383_s9  }
 0x27c PF: > { %s853_s30 = sand.u32 1, %s1359_s18   ;;  %p1731_p5 = scmp.ne.s32.totalorder %s1721_s25, 0 }
 0x27d   : > { %p1732_p9 = scmp.ge.s32.totalorder %s1371_s21, 2  ;;  %s854_s7 = scalar_lea.sflag [#allocation4], %s853_s30 }
 0x27f   : > { %p1089_p12 = pnand %p1732_p9, %p1731_p5 }
 0x281   : > { %1354 = dma.done.wait (!%p1089_p12), %s854_s7, 512  }
 0x282   : > { %1356 = vsyncadd (!%p1089_p12), %s854_s7, 4294966784  ;;  %p19_p2 = scmp.ge.s32.totalorder %s1527_s16, 4   ;;  %s1733_s18 = smov %s1363_s19 }
 0x283   : > { %s1734_s19 = smov %s1367_s20  ;;  %s1735_s20 = smov %s1536_s27 }
 0x284   : > { %s1736_s21 = smov %s1527_s16  ;;  %21 = sbr.rel (!%p19_p2) target bundleno = 6 (0x6), region = 93 }
 0x28b   :  { %859 = vsyncpa [#allocation3], 1 }
 0x28c   :  { %861 = vsyncpa [#allocation3 + $0x1], 1 }
 0x28d   :  { %862 = vsyncpa [#allocation6], 1 }
 0x28e   :  { %863 = vsyncpa [#allocation4], 1 }
 0x28f   :  { %865 = vsyncpa [#allocation4 + $0x1], 1 }

</bundles_post_ra>
